<compile_context>
chip_gen: v6e
topology: v6e:2x2x1
jax: 0.10.0
libtpu: 0.0.40
codegen_flags: <defaults>
</compile_context>

<pallas_src>
import jax
import jax.numpy as jnp
from jax.experimental import pallas as pl
from jax.experimental.pallas import tpu as pltpu

LATENT_LIMIT = 10.0  # grad_clip only affects backward hooks -> no forward effect
# TODO(synk): register_hook gradient clamping is backward-only; not represented
#             in this forward kernel (only matters if a custom VJP is added).

LANE = 128        # lane width: last dim of every block is a multiple of this
BATCH_ALIGN = 16  # bf16 sublane packing for activation rows


def _round_up(n, m):
    return ((n + m - 1) // m) * m


def _pad_to(a, shape):
    pads = [(0, s - d) for d, s in zip(a.shape, shape)]
    if any(hi for _, hi in pads):
        a = jnp.pad(a, pads)
    return a


def _vmem_capacity_bytes():
    """Physical VMEM of the local chip (generation-aware, with safe fallbacks)."""
    try:
        cap = int(pltpu.get_tpu_info().vmem_capacity_bytes)
        if cap > 0:
            return cap
    except Exception:
        pass
    try:
        kind = jax.devices()[0].device_kind.lower()
    except Exception:
        kind = ""
    if "v7" in kind:
        return 64 * 1024 * 1024
    if "v5" in kind or "v6" in kind:
        return 128 * 1024 * 1024
    return 64 * 1024 * 1024  # conservative default


def _num_tensorcores():
    """2 TensorCores per chip on v7x, 1 on v5e/v6e (used only for batch split)."""
    try:
        kind = jax.devices()[0].device_kind.lower()
    except Exception:
        return 1
    return 2 if "v7" in kind else 1


def _vmem_estimate(block_b, block_k, block_h, out_p):
    """Conservative VMEM bytes (assumes double-buffering of every streamed block)."""
    return (
        2 * block_b * block_k * 2          # x tile (bf16)
        + 2 * block_k * block_h * 2        # W1 chunk (bf16)
        + 2 * block_h * out_p * 2          # W2 chunk (bf16)
        + 2 * 8 * block_h * 4              # b1 chunk (f32, sublane-padded)
        + 2 * 8 * out_p * 4                # b2       (f32, sublane-padded)
        + 2 * block_b * out_p * 4          # resident output tile (f32)
        + block_b * block_h * 4            # hidden accumulator scratch (f32)
        + block_b * max(block_h, out_p) * 4  # live epilogue temporaries
    )


def _choose_tiles(b_pad, in_p, hid_p, out_p, vmem_budget, num_tc):
    # --- batch tile ---------------------------------------------------------
    # Single-TC chips (v5e/v6e): one large MXU-friendly tile (<=512 rows).
    # Dual-TC chips (v7x): split into an EVEN number of >=256-row tiles so both
    # cores get equal work from the "parallel" grid axis.
    block_b = min(512, b_pad)
    if num_tc >= 2 and b_pad >= 512:
        n_b = max(2, pl.cdiv(b_pad, 512))
        if n_b % 2:
            n_b += 1
        cand = _round_up(pl.cdiv(b_pad, n_b), BATCH_ALIGN)
        cand = max(cand, 256)
        block_b = max(BATCH_ALIGN, min(512, cand))

    def fits(bb, bh, bk):
        return _vmem_estimate(bb, bk, bh, out_p) <= vmem_budget

    # --- hidden / input-K tiles --------------------------------------------
    # Prefer fully resident weights (no re-streaming); shrink only when needed.
    block_h, block_k = hid_p, in_p
    while not fits(block_b, block_h, block_k) and block_k > 512:
        block_k = _round_up(pl.cdiv(block_k, 2), LANE)
    while not fits(block_b, block_h, block_k) and block_h > 512:
        block_h = _round_up(pl.cdiv(block_h, 2), LANE)
    while not fits(block_b, block_h, block_k) and block_k > 256:
        block_k = _round_up(pl.cdiv(block_k, 2), LANE)
    while not fits(block_b, block_h, block_k) and block_h > 256:
        block_h = _round_up(pl.cdiv(block_h, 2), LANE)
    while not fits(block_b, block_h, block_k) and block_b > BATCH_ALIGN:
        block_b = max(BATCH_ALIGN, _round_up(pl.cdiv(block_b, 2), BATCH_ALIGN))
    return block_b, block_h, block_k


def encoder_kernel(x_ref, w1_ref, b1_ref, w2_ref, b2_ref, o_ref, h_acc):
    """Grid = (batch tile i, hidden chunk j, input chunk k); k,j are reductions."""
    j = pl.program_id(1)
    k = pl.program_id(2)
    nj = pl.num_programs(1)
    nk = pl.num_programs(2)

    # The f32 output block is resident across (j, k): zero it once per batch tile.
    @pl.when(jnp.logical_and(j == 0, k == 0))
    def _():
        o_ref[...] = jnp.zeros_like(o_ref)

    @pl.when(k == 0)
    def _():
        h_acc[...] = jnp.zeros_like(h_acc)

    # enc1 partial product on the MXU: bf16 operands, f32 accumulation.
    h_acc[...] += jnp.dot(x_ref[...], w1_ref[...],
                          preferred_element_type=jnp.float32)

    @pl.when(k == nk - 1)
    def _():
        # bias + ReLU in f32 (VPU), then fold this hidden chunk straight into
        # the resident output block (no separate accumulator scratch).
        h = jnp.maximum(h_acc[...] + b1_ref[...], 0.0)
        o_ref[...] += jnp.dot(h.astype(jnp.bfloat16), w2_ref[...],
                              preferred_element_type=jnp.float32)

        @pl.when(j == nj - 1)
        def _():
            y = o_ref[...] + b2_ref[...]
            o_ref[...] = (jnp.tanh(y) * LATENT_LIMIT).astype(o_ref.dtype)


def _spec(shape, index_map, constant, use_buffered, bufs=2):
    if use_buffered:
        if constant:
            return pl.BlockSpec(shape, index_map, pipeline_mode=pl.Buffered(1))
        if bufs != 2:
            return pl.BlockSpec(shape, index_map, pipeline_mode=pl.Buffered(bufs))
    return pl.BlockSpec(shape, index_map)


def encoder_forward(x, w1, b1, w2, b2, *, block_b=None, block_h=None,
                    block_k=None, use_buffered=True):
    """x: (B, input_dim); w1: (input_dim, hidden); w2: (hidden, out). Returns f32 (B, out)."""
    B, input_dim = x.shape
    hidden_dim = w1.shape[1]
    output_dim = w2.shape[1]

    # Lane-dense padding of every feature dim (zero padding is exact here:
    # padded rows/cols contribute 0 through ReLU and W2, and padded output
    # rows/cols are sliced off).
    in_p = _round_up(input_dim, LANE)
    hid_p = _round_up(hidden_dim, LANE)
    out_p = _round_up(output_dim, LANE)
    b_pad = _round_up(B, BATCH_ALIGN)

    vmem_cap = _vmem_capacity_bytes()
    vmem_budget = int(0.85 * vmem_cap)
    num_tc = _num_tensorcores()

    bb, bh, bk = _choose_tiles(b_pad, in_p, hid_p, out_p, vmem_budget, num_tc)
    if block_b is not None:
        bb = block_b
    if block_h is not None:
        bh = block_h
    if block_k is not None:
        bk = block_k

    Bp = _round_up(b_pad, bb)
    in_pp = _round_up(in_p, bk)
    hid_pp = _round_up(hid_p, bh)
    num_b = Bp // bb
    num_h = hid_pp // bh
    num_k = in_pp // bk

    # Pad + cast: matmul operands bf16 (MXU native, half the weight DMA bytes);
    # biases stay f32 so the elementwise tail is f32 on all chips (incl. v5e).
    x_p = _pad_to(x, (Bp, in_pp)).astype(jnp.bfloat16)
    w1_p = _pad_to(w1, (in_pp, hid_pp)).astype(jnp.bfloat16)
    w2_p = _pad_to(w2, (hid_pp, out_p)).astype(jnp.bfloat16)
    b1_p = _pad_to(b1.reshape(1, hidden_dim), (1, hid_pp)).astype(jnp.float32)
    b2_p = _pad_to(b2.reshape(1, output_dim), (1, out_p)).astype(jnp.float32)

    # Which blocks have constant block indices across the whole grid.
    x_const = (num_b == 1 and num_k == 1)
    w1_const = (num_h == 1 and num_k == 1)
    b1_const = (num_h == 1)
    w2_const = (num_h == 1)

    # On big-VMEM chips (v5e/v6e) a third buffer on the streamed weight chunks
    # hides weight-DMA latency in the inner reduction loop.
    wchunk_bufs = 3 if (vmem_cap >= 96 * 1024 * 1024 and not w1_const) else 2

    in_specs = [
        _spec((bb, bk), lambda i, j, k: (i, k), x_const, use_buffered),
        _spec((bk, bh), lambda i, j, k: (k, j), w1_const, use_buffered, wchunk_bufs),
        _spec((1, bh), lambda i, j, k: (0, j), b1_const, use_buffered),
        _spec((bh, out_p), lambda i, j, k: (j, 0), w2_const, use_buffered, wchunk_bufs),
        _spec((1, out_p), lambda i, j, k: (0, 0), True, use_buffered),
    ]
    out_spec = pl.BlockSpec((bb, out_p), lambda i, j, k: (i, 0))

    est = _vmem_estimate(bb, bk, bh, out_p)
    vmem_limit = int(min(max(int(1.5 * est), 8 * 1024 * 1024),
                         int(0.875 * vmem_cap)))

    # Weights are re-streamed once per batch tile whenever they are tiled.
    weight_restream = num_b if (num_h * num_k > 1) else 1
    cost = pl.CostEstimate(
        flops=2 * Bp * (in_pp * hid_pp + hid_pp * out_p),
        transcendentals=Bp * out_p,
        bytes_accessed=(x_p.size * 2
                        + weight_restream * (w1_p.size * 2 + w2_p.size * 2)
                        + b1_p.size * 4 + b2_p.size * 4
                        + Bp * out_p * 4),
    )

    out_padded = pl.pallas_call(
        encoder_kernel,
        out_shape=jax.ShapeDtypeStruct((Bp, out_p), jnp.float32),
        grid_spec=pltpu.PrefetchScalarGridSpec(
            num_scalar_prefetch=0,
            grid=(num_b, num_h, num_k),
            in_specs=in_specs,
            out_specs=out_spec,
            scratch_shapes=[pltpu.VMEM((bb, bh), jnp.float32)],
        ),
        compiler_params=pltpu.CompilerParams(
            dimension_semantics=("parallel", "arbitrary", "arbitrary"),
            vmem_limit_bytes=vmem_limit,
        ),
        cost_estimate=cost,
    )(x_p, w1_p, b1_p, w2_p, b2_p)

    # NOTE: this slice is an extra XLA copy; callers that tolerate padded
    # outputs can consume `out_padded` directly. Output is always f32, matching
    # the PyTorch module.
    return out_padded[:B, :output_dim]


def init_params(key, input_dim, hidden_dim, output_dim, dtype=jnp.float32):
    """Deterministic PyTorch-style Linear init: U(-1/sqrt(fan_in), 1/sqrt(fan_in))."""
    k1, k2, k3, k4 = jax.random.split(key, 4)
    bound1 = 1.0 / (input_dim ** 0.5)
    bound2 = 1.0 / (hidden_dim ** 0.5)
    # stored as (in, out) for the kernel (transpose of PyTorch's (out, in))
    w1 = jax.random.uniform(k1, (input_dim, hidden_dim), dtype, -bound1, bound1)
    b1 = jax.random.uniform(k2, (hidden_dim,), dtype, -bound1, bound1)
    w2 = jax.random.uniform(k3, (hidden_dim, output_dim), dtype, -bound2, bound2)
    b2 = jax.random.uniform(k4, (output_dim,), dtype, -bound2, bound2)
    return w1, b1, w2, b2


def _reference(x, w1, b1, w2, b2):
    """Plain-JAX reference with the same bf16 matmul operands / f32 accumulation."""
    xb, w1b, w2b = (a.astype(jnp.bfloat16) for a in (x, w1, w2))
    h = jnp.maximum(jnp.dot(xb, w1b, preferred_element_type=jnp.float32) + b1, 0.0)
    y = jnp.dot(h.astype(jnp.bfloat16), w2b, preferred_element_type=jnp.float32) + b2
    return jnp.tanh(y) * LATENT_LIMIT


if __name__ == "__main__":
    key = jax.random.PRNGKey(0)
    kx, kp, kx2, kp2 = jax.random.split(key, 4)

    # --- small shape: single grid step, fully resident weights -------------
    batch, input_dim, hidden_dim, output_dim = 8, 16, 32, 8
    x = jax.random.normal(kx, (batch, input_dim), dtype=jnp.float32)
    w1, b1, w2, b2 = init_params(kp, input_dim, hidden_dim, output_dim)

    try:
        out = encoder_forward(x, w1, b1, w2, b2)
    except Exception:
        # Fallback if this JAX build rejects pipeline_mode=pl.Buffered(n) specs.
        out = encoder_forward(x, w1, b1, w2, b2, use_buffered=False)
    out = jax.block_until_ready(out)

    y_ref = _reference(x, w1, b1, w2, b2)
    assert out.shape == (batch, output_dim)
    assert out.dtype == jnp.float32
    assert jnp.allclose(out, y_ref, atol=5e-3, rtol=5e-3)

    # --- slightly larger shape with forced small tiles: exercises the 3-D grid
    #     (batch x hidden x input-K reductions) and in-place output accumulation.
    batch2, in2, hid2, od2 = 24, 256, 256, 48
    x2 = jax.random.normal(kx2, (batch2, in2), dtype=jnp.float32)
    p2 = init_params(kp2, in2, hid2, od2)
    try:
        o2 = encoder_forward(x2, *p2, block_b=16, block_h=128, block_k=128)
    except Exception:
        o2 = encoder_forward(x2, *p2, block_b=16, block_h=128, block_k=128,
                             use_buffered=False)
    o2 = jax.block_until_ready(o2)
    r2 = _reference(x2, *p2)
    assert o2.shape == (batch2, od2)
    assert o2.dtype == jnp.float32
    assert jnp.allclose(o2, r2, atol=2e-2, rtol=2e-2)

    print("KERNEL_OK")
</pallas_src>

<mosaic_0001>
module attributes {stable_mosaic.version = 11 : i64} {
  func.func @encoder_kernel(%arg0: i32, %arg1: i32, %arg2: i32, %arg3: memref<16x128xbf16, #tpu.memory_space<vmem>>, %arg4: memref<128x128xbf16, #tpu.memory_space<vmem>>, %arg5: memref<1x128xf32, #tpu.memory_space<vmem>>, %arg6: memref<128x128xbf16, #tpu.memory_space<vmem>>, %arg7: memref<1x128xf32, #tpu.memory_space<vmem>>, %arg8: memref<16x128xf32, #tpu.memory_space<vmem>>, %arg9: memref<16x128xf32, #tpu.memory_space<vmem>>) attributes {dimension_semantics = [#tpu.dimension_semantics<parallel>, #tpu.dimension_semantics<arbitrary>, #tpu.dimension_semantics<arbitrary>], iteration_bounds = array<i64: 1, 1, 1>, scalar_prefetch = 0 : i64, scratch_operands = 1 : i64, tpu.core_type = #tpu.core_type<tc>, window_params = [{pipeline_mode = #tpu.pipeline_mode<synchronous>, transform_indices = @transform_0, window_bounds = array<i64: 16, 128>}, {pipeline_mode = #tpu.pipeline_mode<synchronous>, transform_indices = @transform_1, window_bounds = array<i64: 128, 128>}, {pipeline_mode = #tpu.pipeline_mode<synchronous>, transform_indices = @transform_2, window_bounds = array<i64: 1, 128>}, {pipeline_mode = #tpu.pipeline_mode<synchronous>, transform_indices = @transform_3, window_bounds = array<i64: 128, 128>}, {pipeline_mode = #tpu.pipeline_mode<synchronous>, transform_indices = @transform_4, window_bounds = array<i64: 1, 128>}, {transform_indices = @transform_5, window_bounds = array<i64: 16, 128>}]} {
    %c0_i32 = arith.constant 0 : i32
    %0 = arith.cmpi eq, %arg1, %c0_i32 : i32
    %c0_i32_0 = arith.constant 0 : i32
    %1 = arith.cmpi eq, %arg2, %c0_i32_0 : i32
    %2 = arith.andi %0, %1 : i1
    %3 = arith.extui %2 : i1 to i32
    %c0_i32_1 = arith.constant 0 : i32
    %4 = arith.cmpi ne, %3, %c0_i32_1 : i32
    scf.if %4 {
      %cst_13 = arith.constant 0.000000e+00 : f32
      %17 = vector.broadcast %cst_13 : f32 to vector<16x128xf32>
      %c0_14 = arith.constant 0 : index
      %c0_15 = arith.constant 0 : index
      %18 = vector.load %arg8[%c0_14, %c0_15] : memref<16x128xf32, #tpu.memory_space<vmem>>, vector<16x128xf32>
      tpu.vector_store %arg8[%c0_14, %c0_15], %17 {strides = array<i32>} : memref<16x128xf32, #tpu.memory_space<vmem>>, vector<16x128xf32>,
    } else {
    }
    %c0_i32_2 = arith.constant 0 : i32
    %5 = arith.cmpi eq, %arg2, %c0_i32_2 : i32
    %6 = arith.extui %5 : i1 to i32
    %c0_i32_3 = arith.constant 0 : i32
    %7 = arith.cmpi ne, %6, %c0_i32_3 : i32
    scf.if %7 {
      %cst_13 = arith.constant 0.000000e+00 : f32
      %17 = vector.broadcast %cst_13 : f32 to vector<16x128xf32>
      %c0_14 = arith.constant 0 : index
      %c0_15 = arith.constant 0 : index
      %18 = vector.load %arg9[%c0_14, %c0_15] : memref<16x128xf32, #tpu.memory_space<vmem>>, vector<16x128xf32>
      tpu.vector_store %arg9[%c0_14, %c0_15], %17 {strides = array<i32>} : memref<16x128xf32, #tpu.memory_space<vmem>>, vector<16x128xf32>,
    } else {
    }
    %c0 = arith.constant 0 : index
    %c0_4 = arith.constant 0 : index
    %8 = vector.load %arg9[%c0, %c0_4] : memref<16x128xf32, #tpu.memory_space<vmem>>, vector<16x128xf32>
    %c0_5 = arith.constant 0 : index
    %c0_6 = arith.constant 0 : index
    %9 = vector.load %arg3[%c0_5, %c0_6] : memref<16x128xbf16, #tpu.memory_space<vmem>>, vector<16x128xbf16>
    %c0_7 = arith.constant 0 : index
    %c0_8 = arith.constant 0 : index
    %10 = vector.load %arg4[%c0_7, %c0_8] : memref<128x128xbf16, #tpu.memory_space<vmem>>, vector<128x128xbf16>
    %cst = arith.constant dense<0.000000e+00> : vector<16x128xf32>
    %11 = tpu.matmul %9, %10, %cst {dimension_numbers = #tpu.dot_dimension_numbers<[1], [0], [0], [1], [0, 0, 1, 1], [], []>} : vector<16x128xbf16>, vector<128x128xbf16>, vector<16x128xf32> -> vector<16x128xf32>
    %12 = arith.addf %8, %11 : vector<16x128xf32>
    %c0_9 = arith.constant 0 : index
    %c0_10 = arith.constant 0 : index
    %13 = vector.load %arg9[%c0_9, %c0_10] : memref<16x128xf32, #tpu.memory_space<vmem>>, vector<16x128xf32>
    tpu.vector_store %arg9[%c0_9, %c0_10], %12 {strides = array<i32>} : memref<16x128xf32, #tpu.memory_space<vmem>>, vector<16x128xf32>,
    %c0_i32_11 = arith.constant 0 : i32
    %14 = arith.cmpi eq, %arg2, %c0_i32_11 : i32
    %15 = arith.extui %14 : i1 to i32
    %c0_i32_12 = arith.constant 0 : i32
    %16 = arith.cmpi ne, %15, %c0_i32_12 : i32
    scf.if %16 {
      %c0_13 = arith.constant 0 : index
      %c0_14 = arith.constant 0 : index
      %17 = vector.load %arg9[%c0_13, %c0_14] : memref<16x128xf32, #tpu.memory_space<vmem>>, vector<16x128xf32>
      %c0_15 = arith.constant 0 : index
      %c0_16 = arith.constant 0 : index
      %18 = vector.load %arg5[%c0_15, %c0_16] : memref<1x128xf32, #tpu.memory_space<vmem>>, vector<1x128xf32>
      %19 = vector.broadcast %18 : vector<1x128xf32> to vector<16x128xf32>
      %20 = arith.addf %17, %19 : vector<16x128xf32>
      %cst_17 = arith.constant 0.000000e+00 : f32
      %21 = vector.broadcast %cst_17 : f32 to vector<16x128xf32>
      %22 = arith.maximumf %20, %21 : vector<16x128xf32>
      %c0_18 = arith.constant 0 : index
      %c0_19 = arith.constant 0 : index
      %23 = vector.load %arg8[%c0_18, %c0_19] : memref<16x128xf32, #tpu.memory_space<vmem>>, vector<16x128xf32>
      %24 = arith.truncf %22 : vector<16x128xf32> to vector<16x128xbf16>
      %c0_20 = arith.constant 0 : index
      %c0_21 = arith.constant 0 : index
      %25 = vector.load %arg6[%c0_20, %c0_21] : memref<128x128xbf16, #tpu.memory_space<vmem>>, vector<128x128xbf16>
      %cst_22 = arith.constant dense<0.000000e+00> : vector<16x128xf32>
      %26 = tpu.matmul %24, %25, %cst_22 {dimension_numbers = #tpu.dot_dimension_numbers<[1], [0], [0], [1], [0, 0, 1, 1], [], []>} : vector<16x128xbf16>, vector<128x128xbf16>, vector<16x128xf32> -> vector<16x128xf32>
      %27 = arith.addf %23, %26 : vector<16x128xf32>
      %c0_23 = arith.constant 0 : index
      %c0_24 = arith.constant 0 : index
      %28 = vector.load %arg8[%c0_23, %c0_24] : memref<16x128xf32, #tpu.memory_space<vmem>>, vector<16x128xf32>
      tpu.vector_store %arg8[%c0_23, %c0_24], %27 {strides = array<i32>} : memref<16x128xf32, #tpu.memory_space<vmem>>, vector<16x128xf32>,
      %c0_i32_25 = arith.constant 0 : i32
      %29 = arith.cmpi eq, %arg1, %c0_i32_25 : i32
      %30 = arith.extui %29 : i1 to i32
      %c0_i32_26 = arith.constant 0 : i32
      %31 = arith.cmpi ne, %30, %c0_i32_26 : i32
      scf.if %31 {
        %c0_27 = arith.constant 0 : index
        %c0_28 = arith.constant 0 : index
        %32 = vector.load %arg8[%c0_27, %c0_28] : memref<16x128xf32, #tpu.memory_space<vmem>>, vector<16x128xf32>
        %c0_29 = arith.constant 0 : index
        %c0_30 = arith.constant 0 : index
        %33 = vector.load %arg7[%c0_29, %c0_30] : memref<1x128xf32, #tpu.memory_space<vmem>>, vector<1x128xf32>
        %34 = vector.broadcast %33 : vector<1x128xf32> to vector<16x128xf32>
        %35 = arith.addf %32, %34 : vector<16x128xf32>
        %36 = math.tanh %35 : vector<16x128xf32>
        %cst_31 = arith.constant 1.000000e+01 : f32
        %37 = vector.broadcast %cst_31 : f32 to vector<16x128xf32>
        %38 = arith.mulf %36, %37 : vector<16x128xf32>
        %c0_32 = arith.constant 0 : index
        %c0_33 = arith.constant 0 : index
        %39 = vector.load %arg8[%c0_32, %c0_33] : memref<16x128xf32, #tpu.memory_space<vmem>>, vector<16x128xf32>
        tpu.vector_store %arg8[%c0_32, %c0_33], %38 {strides = array<i32>} : memref<16x128xf32, #tpu.memory_space<vmem>>, vector<16x128xf32>,
      } else {
      }
    } else {
    }
    return
  }
  func.func @transform_0(%arg0: i32, %arg1: i32, %arg2: i32) -> (i32, i32) {
    %c0_i32 = arith.constant 0 : i32
    return %arg0, %arg2 : i32, i32
  }
  func.func @transform_1(%arg0: i32, %arg1: i32, %arg2: i32) -> (i32, i32) {
    %c0_i32 = arith.constant 0 : i32
    return %arg2, %arg1 : i32, i32
  }
  func.func @transform_2(%arg0: i32, %arg1: i32, %arg2: i32) -> (i32, i32) {
    %c0_i32 = arith.constant 0 : i32
    %c0_i32_0 = arith.constant 0 : i32
    return %c0_i32, %arg1 : i32, i32
  }
  func.func @transform_3(%arg0: i32, %arg1: i32, %arg2: i32) -> (i32, i32) {
    %c0_i32 = arith.constant 0 : i32
    %c0_i32_0 = arith.constant 0 : i32
    return %arg1, %c0_i32 : i32, i32
  }
  func.func @transform_4(%arg0: i32, %arg1: i32, %arg2: i32) -> (i32, i32) {
    %c0_i32 = arith.constant 0 : i32
    %c0_i32_0 = arith.constant 0 : i32
    %c0_i32_1 = arith.constant 0 : i32
    return %c0_i32, %c0_i32_0 : i32, i32
  }
  func.func @transform_5(%arg0: i32, %arg1: i32, %arg2: i32) -> (i32, i32) {
    %c0_i32 = arith.constant 0 : i32
    %c0_i32_0 = arith.constant 0 : i32
    return %arg0, %c0_i32 : i32, i32
  }
}

module attributes {stable_mosaic.version = 11 : i64} {
  func.func @encoder_kernel(%arg0: i32, %arg1: i32, %arg2: i32, %arg3: memref<16x128xbf16, #tpu.memory_space<vmem>>, %arg4: memref<128x128xbf16, #tpu.memory_space<vmem>>, %arg5: memref<1x128xf32, #tpu.memory_space<vmem>>, %arg6: memref<128x128xbf16, #tpu.memory_space<vmem>>, %arg7: memref<1x128xf32, #tpu.memory_space<vmem>>, %arg8: memref<16x128xf32, #tpu.memory_space<vmem>>, %arg9: memref<16x128xf32, #tpu.memory_space<vmem>>) attributes {dimension_semantics = [#tpu.dimension_semantics<parallel>, #tpu.dimension_semantics<arbitrary>, #tpu.dimension_semantics<arbitrary>], iteration_bounds = array<i64: 1, 1, 1>, scalar_prefetch = 0 : i64, scratch_operands = 1 : i64, tpu.core_type = #tpu.core_type<tc>, window_params = [{transform_indices = @transform_0, window_bounds = array<i64: 16, 128>}, {transform_indices = @transform_1, window_bounds = array<i64: 128, 128>}, {transform_indices = @transform_2, window_bounds = array<i64: 1, 128>}, {transform_indices = @transform_3, window_bounds = array<i64: 128, 128>}, {pipeline_mode = #tpu.pipeline_mode<synchronous>, transform_indices = @transform_4, window_bounds = array<i64: 1, 128>}, {transform_indices = @transform_5, window_bounds = array<i64: 16, 128>}]} {
    %c0_i32 = arith.constant 0 : i32
    %0 = arith.cmpi eq, %arg1, %c0_i32 : i32
    %c0_i32_0 = arith.constant 0 : i32
    %1 = arith.cmpi eq, %arg2, %c0_i32_0 : i32
    %2 = arith.andi %0, %1 : i1
    %3 = arith.extui %2 : i1 to i32
    %c0_i32_1 = arith.constant 0 : i32
    %4 = arith.cmpi ne, %3, %c0_i32_1 : i32
    scf.if %4 {
      %cst_13 = arith.constant 0.000000e+00 : f32
      %17 = vector.broadcast %cst_13 : f32 to vector<16x128xf32>
      %c0_14 = arith.constant 0 : index
      %c0_15 = arith.constant 0 : index
      %18 = vector.load %arg8[%c0_14, %c0_15] : memref<16x128xf32, #tpu.memory_space<vmem>>, vector<16x128xf32>
      tpu.vector_store %arg8[%c0_14, %c0_15], %17 {strides = array<i32>} : memref<16x128xf32, #tpu.memory_space<vmem>>, vector<16x128xf32>,
    } else {
    }
    %c0_i32_2 = arith.constant 0 : i32
    %5 = arith.cmpi eq, %arg2, %c0_i32_2 : i32
    %6 = arith.extui %5 : i1 to i32
    %c0_i32_3 = arith.constant 0 : i32
    %7 = arith.cmpi ne, %6, %c0_i32_3 : i32
    scf.if %7 {
      %cst_13 = arith.constant 0.000000e+00 : f32
      %17 = vector.broadcast %cst_13 : f32 to vector<16x128xf32>
      %c0_14 = arith.constant 0 : index
      %c0_15 = arith.constant 0 : index
      %18 = vector.load %arg9[%c0_14, %c0_15] : memref<16x128xf32, #tpu.memory_space<vmem>>, vector<16x128xf32>
      tpu.vector_store %arg9[%c0_14, %c0_15], %17 {strides = array<i32>} : memref<16x128xf32, #tpu.memory_space<vmem>>, vector<16x128xf32>,
    } else {
    }
    %c0 = arith.constant 0 : index
    %c0_4 = arith.constant 0 : index
    %8 = vector.load %arg9[%c0, %c0_4] : memref<16x128xf32, #tpu.memory_space<vmem>>, vector<16x128xf32>
    %c0_5 = arith.constant 0 : index
    %c0_6 = arith.constant 0 : index
    %9 = vector.load %arg3[%c0_5, %c0_6] : memref<16x128xbf16, #tpu.memory_space<vmem>>, vector<16x128xbf16>
    %c0_7 = arith.constant 0 : index
    %c0_8 = arith.constant 0 : index
    %10 = vector.load %arg4[%c0_7, %c0_8] : memref<128x128xbf16, #tpu.memory_space<vmem>>, vector<128x128xbf16>
    %cst = arith.constant dense<0.000000e+00> : vector<16x128xf32>
    %11 = tpu.matmul %9, %10, %cst {dimension_numbers = #tpu.dot_dimension_numbers<[1], [0], [0], [1], [0, 0, 1, 1], [], []>} : vector<16x128xbf16>, vector<128x128xbf16>, vector<16x128xf32> -> vector<16x128xf32>
    %12 = arith.addf %8, %11 : vector<16x128xf32>
    %c0_9 = arith.constant 0 : index
    %c0_10 = arith.constant 0 : index
    %13 = vector.load %arg9[%c0_9, %c0_10] : memref<16x128xf32, #tpu.memory_space<vmem>>, vector<16x128xf32>
    tpu.vector_store %arg9[%c0_9, %c0_10], %12 {strides = array<i32>} : memref<16x128xf32, #tpu.memory_space<vmem>>, vector<16x128xf32>,
    %c0_i32_11 = arith.constant 0 : i32
    %14 = arith.cmpi eq, %arg2, %c0_i32_11 : i32
    %15 = arith.extui %14 : i1 to i32
    %c0_i32_12 = arith.constant 0 : i32
    %16 = arith.cmpi ne, %15, %c0_i32_12 : i32
    scf.if %16 {
      %c0_13 = arith.constant 0 : index
      %c0_14 = arith.constant 0 : index
      %17 = vector.load %arg9[%c0_13, %c0_14] : memref<16x128xf32, #tpu.memory_space<vmem>>, vector<16x128xf32>
      %c0_15 = arith.constant 0 : index
      %c0_16 = arith.constant 0 : index
      %18 = vector.load %arg5[%c0_15, %c0_16] : memref<1x128xf32, #tpu.memory_space<vmem>>, vector<1x128xf32>
      %19 = vector.broadcast %18 : vector<1x128xf32> to vector<16x128xf32>
      %20 = arith.addf %17, %19 : vector<16x128xf32>
      %cst_17 = arith.constant 0.000000e+00 : f32
      %21 = vector.broadcast %cst_17 : f32 to vector<16x128xf32>
      %22 = arith.maximumf %20, %21 : vector<16x128xf32>
      %c0_18 = arith.constant 0 : index
      %c0_19 = arith.constant 0 : index
      %23 = vector.load %arg8[%c0_18, %c0_19] : memref<16x128xf32, #tpu.memory_space<vmem>>, vector<16x128xf32>
      %24 = arith.truncf %22 : vector<16x128xf32> to vector<16x128xbf16>
      %c0_20 = arith.constant 0 : index
      %c0_21 = arith.constant 0 : index
      %25 = vector.load %arg6[%c0_20, %c0_21] : memref<128x128xbf16, #tpu.memory_space<vmem>>, vector<128x128xbf16>
      %cst_22 = arith.constant dense<0.000000e+00> : vector<16x128xf32>
      %26 = tpu.matmul %24, %25, %cst_22 {dimension_numbers = #tpu.dot_dimension_numbers<[1], [0], [0], [1], [0, 0, 1, 1], [], []>} : vector<16x128xbf16>, vector<128x128xbf16>, vector<16x128xf32> -> vector<16x128xf32>
      %27 = arith.addf %23, %26 : vector<16x128xf32>
      %c0_23 = arith.constant 0 : index
      %c0_24 = arith.constant 0 : index
      %28 = vector.load %arg8[%c0_23, %c0_24] : memref<16x128xf32, #tpu.memory_space<vmem>>, vector<16x128xf32>
      tpu.vector_store %arg8[%c0_23, %c0_24], %27 {strides = array<i32>} : memref<16x128xf32, #tpu.memory_space<vmem>>, vector<16x128xf32>,
      %c0_i32_25 = arith.constant 0 : i32
      %29 = arith.cmpi eq, %arg1, %c0_i32_25 : i32
      %30 = arith.extui %29 : i1 to i32
      %c0_i32_26 = arith.constant 0 : i32
      %31 = arith.cmpi ne, %30, %c0_i32_26 : i32
      scf.if %31 {
        %c0_27 = arith.constant 0 : index
        %c0_28 = arith.constant 0 : index
        %32 = vector.load %arg8[%c0_27, %c0_28] : memref<16x128xf32, #tpu.memory_space<vmem>>, vector<16x128xf32>
        %c0_29 = arith.constant 0 : index
        %c0_30 = arith.constant 0 : index
        %33 = vector.load %arg7[%c0_29, %c0_30] : memref<1x128xf32, #tpu.memory_space<vmem>>, vector<1x128xf32>
        %34 = vector.broadcast %33 : vector<1x128xf32> to vector<16x128xf32>
        %35 = arith.addf %32, %34 : vector<16x128xf32>
        %36 = math.tanh %35 : vector<16x128xf32>
        %cst_31 = arith.constant 1.000000e+01 : f32
        %37 = vector.broadcast %cst_31 : f32 to vector<16x128xf32>
        %38 = arith.mulf %36, %37 : vector<16x128xf32>
        %c0_32 = arith.constant 0 : index
        %c0_33 = arith.constant 0 : index
        %39 = vector.load %arg8[%c0_32, %c0_33] : memref<16x128xf32, #tpu.memory_space<vmem>>, vector<16x128xf32>
        tpu.vector_store %arg8[%c0_32, %c0_33], %38 {strides = array<i32>} : memref<16x128xf32, #tpu.memory_space<vmem>>, vector<16x128xf32>,
      } else {
      }
    } else {
    }
    return
  }
  func.func @transform_0(%arg0: i32, %arg1: i32, %arg2: i32) -> (i32, i32) {
    %c0_i32 = arith.constant 0 : i32
    return %arg0, %arg2 : i32, i32
  }
  func.func @transform_1(%arg0: i32, %arg1: i32, %arg2: i32) -> (i32, i32) {
    %c0_i32 = arith.constant 0 : i32
    return %arg2, %arg1 : i32, i32
  }
  func.func @transform_2(%arg0: i32, %arg1: i32, %arg2: i32) -> (i32, i32) {
    %c0_i32 = arith.constant 0 : i32
    %c0_i32_0 = arith.constant 0 : i32
    return %c0_i32, %arg1 : i32, i32
  }
  func.func @transform_3(%arg0: i32, %arg1: i32, %arg2: i32) -> (i32, i32) {
    %c0_i32 = arith.constant 0 : i32
    %c0_i32_0 = arith.constant 0 : i32
    return %arg1, %c0_i32 : i32, i32
  }
  func.func @transform_4(%arg0: i32, %arg1: i32, %arg2: i32) -> (i32, i32) {
    %c0_i32 = arith.constant 0 : i32
    %c0_i32_0 = arith.constant 0 : i32
    %c0_i32_1 = arith.constant 0 : i32
    return %c0_i32, %c0_i32_0 : i32, i32
  }
  func.func @transform_5(%arg0: i32, %arg1: i32, %arg2: i32) -> (i32, i32) {
    %c0_i32 = arith.constant 0 : i32
    %c0_i32_0 = arith.constant 0 : i32
    return %arg0, %c0_i32 : i32, i32
  }
}

</mosaic_0001>

<bundles_post_ra>
// kernel: tpu_custom_call.1
= control target key start
LH: loop header
LB: loop body
LE: loop exit
PB: predicated region body
PF: predicated region fallthrough
CT: control target
= control target key end

     0   :  { %10 = vsyncpa [#allocation4], 0  ;;  %s613_s0 = inlined_call_operand.hbm [shape: bf16[16,128], index: 0, kind: input, shape index: {}]   ;;  %s614_s1 = inlined_call_operand.hbm [shape: bf16[128,128], index: 1, kind: input, shape index: {}]   ;;  %s615_s2 = inlined_call_operand.vmem [shape: f32[1,128], index: 2, kind: input, shape index: {}]   ;;  %s616_s3 = inlined_call_operand.hbm [shape: bf16[128,128], index: 3, kind: input, shape index: {}]   ;;  %s617_s4 = inlined_call_operand.vmem [shape: f32[1,128], index: 4, kind: input, shape index: {}]   ;;  %s618_s5 = inlined_call_operand.hbm [shape: f32[16,128], index: 5, kind: output, shape index: {}]  }
   0x1   :  { %11 = vsyncpa [#allocation7], 0 }
   0x2   :  { %12 = vsyncpa [#allocation5], 0  ;;  %s555_s18 = smov [#allocation6]   ;;  %s556_s20 = smov [#allocation3]  }
   0x3   :  { %s30_s19 = sshll.u32 %s555_s18, 4  ;;  %s18_s21 = sshll.u32 %s556_s20, 4  ;;  %s31_s19 = int_to_ptr.vmem [resolvable:$true] %s30_s19  ;;  %s19_s21 = int_to_ptr.vmem [resolvable:$true] %s18_s21 }
   0x4   :  { %s477_s22 = scalar_lea.vmem %s31_s19, 1024  ;;  %p482_p1 = scmp.lt.s32.totalorder %s31_s19, %s31_s19 }
   0x5   :  { %p478_p0 = scmp.ne.s32.totalorder %s31_s19, %s477_s22  ;;  %p483_p2 = scmp.lt.s32.totalorder %s477_s22, %s477_s22 }
   0x7   :  { %p484_p3 = por %p483_p2, %p482_p1 }
   0x9   :  { %p485_p4 = pnand %p484_p3, %p478_p0 }
   0xb   :  { %488 = shalt.err (!%p485_p4)
}
   0xc   :  { %s557_s23 = smov 64   ;;  %s558_s24 = smov 4  }
   0xd   :  { %36 = dma.hbm_to_vmem [thread:$0]  %s614_s1, 1024, %s31_s19, [#allocation7], %s557_s23, %s557_s23, %s558_s24  }
   0xe   :  { %s497_s27 = scalar_lea.vmem %s19_s21, 128  ;;  %p502_p6 = scmp.lt.s32.totalorder %s19_s21, %s19_s21 }
   0xf   :  { %p498_p5 = scmp.ne.s32.totalorder %s19_s21, %s497_s27  ;;  %p503_p7 = scmp.lt.s32.totalorder %s497_s27, %s497_s27 }
  0x11   :  { %p504_p8 = por %p503_p7, %p502_p6 }
  0x13   :  { %p505_p9 = pnand %p504_p8, %p498_p5 }
  0x15   :  { %508 = shalt.err (!%p505_p9)
}
  0x16   :  { %24 = dma.hbm_to_vmem [thread:$0]  %s613_s0, 128, %s19_s21, [#allocation4], %s557_s23, %s557_s23, %s558_s24  }
  0x17   :  { %s559_s30 = smov [#allocation8]  }
  0x18   :  { %s44_s6 = sshll.u32 %s559_s30, 4  ;;  %s45_s6 = int_to_ptr.vmem [resolvable:$true] %s44_s6 }
  0x19   :  { %s517_s7 = scalar_lea.vmem %s45_s6, 1024  ;;  %p522_p11 = scmp.lt.s32.totalorder %s45_s6, %s45_s6 }
  0x1a   :  { %p518_p10 = scmp.ne.s32.totalorder %s45_s6, %s517_s7  ;;  %p523_p12 = scmp.lt.s32.totalorder %s517_s7, %s517_s7 }
  0x1c   :  { %p524_p13 = por %p523_p12, %p522_p11 }
  0x1e   :  { %p525_p0 = pnand %p524_p13, %p518_p10 }
  0x20   :  { %528 = shalt.err (!%p525_p0)
}
  0x21   :  { %50 = dma.hbm_to_vmem [thread:$0]  %s616_s3, 1024, %s45_s6, [#allocation7], %s557_s23, %s557_s23, %s558_s24  }
  0x22   :  { %549 = dma.done.wait [#allocation4], 128  }
  0x23   :  { %550 = vsyncadd [#allocation4], 4294967168 }
  0x24   :  { %551 = dma.done.wait [#allocation7], 2048  }
  0x25   :  { %552 = vsyncadd [#allocation7], 4294965248  ;;  %v560_v0 = vmov 0.0   ;;  %vm561_vm0 = vmmov 0   ;;  %v448_v1 = vld [vmem:[#allocation6 + $0x38] sm:$0xff]   ;;  %v449_v2 = vld [vmem:[#allocation6 + $0x30] sm:$0xff]  }
  0x26   :  { %398 = vmatprep.subr.bf16.mxu0 %v560_v0  ;;  %414 = vmatprep.mubr.msk.bf16.mxu0 %vm561_vm0, %v560_v0  ;;  %v450_v3 = vld [vmem:[#allocation6 + $0x28] sm:$0xff]   ;;  %v457_v4 = vld [vmem:[#allocation8 + $0x38] sm:$0xff]   ;;  %v451_v5 = vld [vmem:[#allocation6 + $0x20] sm:$0xff]  }
  0x27   :  { %418 = vmatprep.subr.bf16.mxu1 %v560_v0  ;;  %434 = vmatprep.mubr.msk.bf16.mxu1 %vm561_vm0, %v560_v0  ;;  %v458_v6 = vld [vmem:[#allocation8 + $0x30] sm:$0xff]   ;;  %v452_v7 = vld [vmem:[#allocation6 + $0x18] sm:$0xff]   ;;  %v459_v8 = vld [vmem:[#allocation8 + $0x28] sm:$0xff]  }
  0x28   :  { %399 = vmatpush3.bf16.msra.mxu0 %v448_v1  ;;  %419 = vmatpush3.bf16.msra.mxu1 %v457_v4  ;;  %v453_v9 = vld [vmem:[#allocation6 + $0x10] sm:$0xff]   ;;  %v460_v10 = vld [vmem:[#allocation8 + $0x20] sm:$0xff]   ;;  %v454_v11 = vld [vmem:[#allocation6 + $0x8] sm:$0xff]  }
  0x29   :  { %400 = vmatprep.subr.bf16.mxu0 %v560_v0  ;;  %420 = vmatprep.subr.bf16.mxu1 %v560_v0  ;;  %v461_v12 = vld [vmem:[#allocation8 + $0x18] sm:$0xff]   ;;  %v455_v13 = vld [vmem:[#allocation6] sm:$0xff]   ;;  %v462_v15 = vld [vmem:[#allocation8 + $0x10] sm:$0xff]  }
  0x2a   :  { %v456_v14 = vld [vmem:[#allocation3] sm:$0xff]   ;;  %v463_v16 = vld [vmem:[#allocation8 + $0x8] sm:$0xff]   ;;  %v464_v17 = vld [vmem:[#allocation8] sm:$0xff]  }
  0x2b   :  { %v370_v19 = vld [vmem:[%s615_s2] ss:$0 sm:$0xff]  ;;  %s562_s2 = smov [#allocation9]  }
  0x2c   :  { %401 = vmatpush3.bf16.msra.mxu0 %v449_v2  ;;  %421 = vmatpush3.bf16.msra.mxu1 %v458_v6  ;;  %v379_v29 = vld [vmem:[%s617_s4] ss:$0 sm:$0xff]  ;;  %s348_s11 = sshll.u32 %s562_s2, 4  ;;  %s349_s11 = int_to_ptr.vmem [resolvable:$true] %s348_s11 }
  0x2d   :  { %402 = vmatprep.subr.bf16.mxu0 %v560_v0  ;;  %422 = vmatprep.subr.bf16.mxu1 %v560_v0  ;;  %s529_s12 = scalar_lea.vmem %s349_s11, 256  ;;  %p534_p2 = scmp.lt.s32.totalorder %s349_s11, %s349_s11 }
  0x2e   :  { %p530_p1 = scmp.ne.s32.totalorder %s349_s11, %s529_s12  ;;  %p535_p3 = scmp.lt.s32.totalorder %s529_s12, %s529_s12 }
  0x30   :  { %403 = vmatpush3.bf16.msra.mxu0 %v450_v3  ;;  %423 = vmatpush3.bf16.msra.mxu1 %v459_v8  ;;  %p536_p4 = por %p535_p3, %p534_p2 }
  0x31   :  { %404 = vmatprep.subr.bf16.mxu0 %v560_v0  ;;  %424 = vmatprep.subr.bf16.mxu1 %v560_v0 }
  0x32   :  { %p537_p5 = pnand %p536_p4, %p530_p1 }
  0x34   :  { %405 = vmatpush3.bf16.msra.mxu0 %v451_v5  ;;  %425 = vmatpush3.bf16.msra.mxu1 %v460_v10 }
  0x35   :  { %406 = vmatprep.subr.bf16.mxu0 %v560_v0  ;;  %426 = vmatprep.subr.bf16.mxu1 %v560_v0 }
  0x38   :  { %407 = vmatpush3.bf16.msra.mxu0 %v452_v7  ;;  %427 = vmatpush3.bf16.msra.mxu1 %v461_v12 }
  0x39   :  { %408 = vmatprep.subr.bf16.mxu0 %v560_v0  ;;  %428 = vmatprep.subr.bf16.mxu1 %v560_v0 }
  0x3c   :  { %409 = vmatpush3.bf16.msra.mxu0 %v453_v9  ;;  %429 = vmatpush3.bf16.msra.mxu1 %v462_v15 }
  0x3d   :  { %410 = vmatprep.subr.bf16.mxu0 %v560_v0  ;;  %430 = vmatprep.subr.bf16.mxu1 %v560_v0 }
  0x40   :  { %411 = vmatpush3.bf16.msra.mxu0 %v454_v11  ;;  %431 = vmatpush3.bf16.msra.mxu1 %v463_v16 }
  0x41   :  { %412 = vmatprep.subr.bf16.mxu0 %v560_v0  ;;  %432 = vmatprep.subr.bf16.mxu1 %v560_v0 }
  0x44   :  { %413 = vmatpush3.bf16.msra.mxu0 %v455_v13  ;;  %433 = vmatpush3.bf16.msra.mxu1 %v464_v17 }
  0x47   :  { %415 = vmatmul.mubr.bf16.vlgmr.msra.gmra.mxu0 %v456_v14 }
 0x107   :  { %v184_v18 = vpop.f32.mrf.mxu0 }
 0x108   :  { %v207_v21 = vadd.f32 %v370_v19, %v184_v18 }
 0x109   :  { %v416_v20 = vpop.f32.mrf.mxu0 }
 0x10a   :  { %v209_v25 = vmax.f32 %v207_v21, 0.0 }
 0x10b   :  { %v187_v22 = vpop.f32.mrf.mxu0 }
 0x10c   :  { %v208_v23 = vadd.f32 %v370_v19, %v187_v22 }
 0x10d   :  { %v417_v24 = vpop.f32.mrf.mxu0 }
 0x10e   :  { %v210_v26 = vmax.f32 %v208_v23, 0.0 }
 0x110   :  { %v213_v27 = vpack.c.bf16 %v210_v26, %v209_v25 }
 0x112   :  { %435 = vmatmul.mubr.bf16.vlgmr.msra.gmra.mxu1 %v213_v27 }
 0x1d2   :  { %v312_v28 = vpop.f32.mrf.mxu1 }
 0x1d3   :  { %v335_v31 = vadd.f32 %v379_v29, %v312_v28 }
 0x1d4   :  { %v436_v30 = vpop.f32.mrf.mxu1 }
 0x1d5   :  { %465 = vtanh.f32 %v335_v31 }
 0x1d6   :  { %v315_v32 = vpop.f32.mrf.mxu1 }
 0x1d7   :  { %v336_v34 = vadd.f32 %v379_v29, %v315_v32 }
 0x1d8   :  { %v437_v33 = vpop.f32.mrf.mxu1 }
 0x1d9   :  { %467 = vtanh.f32 %v336_v34 }
 0x1e2   :  { %v466_v35 = vpop.eup %465 }
 0x1e3   :  { %v339_v36 = vmul.f32 10.0, %v466_v35 }
 0x1e5   :  { %341 = vst [vmem:[#allocation9] sm:$0xff] %v339_v36 }
 0x1e6   :  { %v468_v37 = vpop.eup %467 }
 0x1e7   :  { %v340_v38 = vmul.f32 10.0, %v468_v37 }
 0x1e9   :  { %342 = vst [vmem:[#allocation9 + $0x8] sm:$0xff] %v340_v38 }
 0x1ea   :  { %540 = shalt.err (!%p537_p5)
}
 0x1eb   :  { %s563_s4 = smov 128   ;;  %s564_s13 = smov 8  }
 0x1ec   :  { %354 = dma.vmem_to_hbm [thread:$0]  %s349_s11, 256, %s618_s5, [#allocation5], %s563_s4, %s563_s4, %s564_s13  }
 0x1ed   :  { %553 = dma.done.wait [#allocation5], 256  }
 0x1ee   :  { %554 = vsyncadd [#allocation5], 4294967040 }
 0x1ef   :  { %358 = vsyncpa [#allocation4], 1 }
 0x1f0   :  { %359 = vsyncpa [#allocation7], 1 }
 0x1f1   :  { %360 = vsyncpa [#allocation5], 1 }

// kernel: tpu_custom_call.1
= control target key start
LH: loop header
LB: loop body
LE: loop exit
PB: predicated region body
PF: predicated region fallthrough
CT: control target
= control target key end

     0   :  { %10 = vsyncpa [#allocation4], 0  ;;  %s613_s0 = inlined_call_operand.hbm [shape: bf16[16,128], index: 0, kind: input, shape index: {}]   ;;  %s614_s1 = inlined_call_operand.hbm [shape: bf16[128,128], index: 1, kind: input, shape index: {}]   ;;  %s615_s2 = inlined_call_operand.vmem [shape: f32[1,128], index: 2, kind: input, shape index: {}]   ;;  %s616_s3 = inlined_call_operand.hbm [shape: bf16[128,128], index: 3, kind: input, shape index: {}]   ;;  %s617_s4 = inlined_call_operand.vmem [shape: f32[1,128], index: 4, kind: input, shape index: {}]   ;;  %s618_s5 = inlined_call_operand.hbm [shape: f32[16,128], index: 5, kind: output, shape index: {}]  }
   0x1   :  { %11 = vsyncpa [#allocation7], 0 }
   0x2   :  { %12 = vsyncpa [#allocation5], 0  ;;  %s555_s18 = smov [#allocation6]   ;;  %s556_s20 = smov [#allocation3]  }
   0x3   :  { %s30_s19 = sshll.u32 %s555_s18, 4  ;;  %s18_s21 = sshll.u32 %s556_s20, 4  ;;  %s31_s19 = int_to_ptr.vmem [resolvable:$true] %s30_s19  ;;  %s19_s21 = int_to_ptr.vmem [resolvable:$true] %s18_s21 }
   0x4   :  { %s477_s22 = scalar_lea.vmem %s31_s19, 1024  ;;  %p482_p1 = scmp.lt.s32.totalorder %s31_s19, %s31_s19 }
   0x5   :  { %p478_p0 = scmp.ne.s32.totalorder %s31_s19, %s477_s22  ;;  %p483_p2 = scmp.lt.s32.totalorder %s477_s22, %s477_s22 }
   0x7   :  { %p484_p3 = por %p483_p2, %p482_p1 }
   0x9   :  { %p485_p4 = pnand %p484_p3, %p478_p0 }
   0xb   :  { %488 = shalt.err (!%p485_p4)
}
   0xc   :  { %s557_s23 = smov 64   ;;  %s558_s24 = smov 4  }
   0xd   :  { %36 = dma.hbm_to_vmem [thread:$0]  %s614_s1, 1024, %s31_s19, [#allocation7], %s557_s23, %s557_s23, %s558_s24  }
   0xe   :  { %s497_s27 = scalar_lea.vmem %s19_s21, 128  ;;  %p502_p6 = scmp.lt.s32.totalorder %s19_s21, %s19_s21 }
   0xf   :  { %p498_p5 = scmp.ne.s32.totalorder %s19_s21, %s497_s27  ;;  %p503_p7 = scmp.lt.s32.totalorder %s497_s27, %s497_s27 }
  0x11   :  { %p504_p8 = por %p503_p7, %p502_p6 }
  0x13   :  { %p505_p9 = pnand %p504_p8, %p498_p5 }
  0x15   :  { %508 = shalt.err (!%p505_p9)
}
  0x16   :  { %24 = dma.hbm_to_vmem [thread:$0]  %s613_s0, 128, %s19_s21, [#allocation4], %s557_s23, %s557_s23, %s558_s24  }
  0x17   :  { %s559_s30 = smov [#allocation8]  }
  0x18   :  { %s44_s6 = sshll.u32 %s559_s30, 4  ;;  %s45_s6 = int_to_ptr.vmem [resolvable:$true] %s44_s6 }
  0x19   :  { %s517_s7 = scalar_lea.vmem %s45_s6, 1024  ;;  %p522_p11 = scmp.lt.s32.totalorder %s45_s6, %s45_s6 }
  0x1a   :  { %p518_p10 = scmp.ne.s32.totalorder %s45_s6, %s517_s7  ;;  %p523_p12 = scmp.lt.s32.totalorder %s517_s7, %s517_s7 }
  0x1c   :  { %p524_p13 = por %p523_p12, %p522_p11 }
  0x1e   :  { %p525_p0 = pnand %p524_p13, %p518_p10 }
  0x20   :  { %528 = shalt.err (!%p525_p0)
}
  0x21   :  { %50 = dma.hbm_to_vmem [thread:$0]  %s616_s3, 1024, %s45_s6, [#allocation7], %s557_s23, %s557_s23, %s558_s24  }
  0x22   :  { %549 = dma.done.wait [#allocation4], 128  }
  0x23   :  { %550 = vsyncadd [#allocation4], 4294967168 }
  0x24   :  { %551 = dma.done.wait [#allocation7], 2048  }
  0x25   :  { %552 = vsyncadd [#allocation7], 4294965248  ;;  %v560_v0 = vmov 0.0   ;;  %vm561_vm0 = vmmov 0   ;;  %v448_v1 = vld [vmem:[#allocation6 + $0x38] sm:$0xff]   ;;  %v449_v2 = vld [vmem:[#allocation6 + $0x30] sm:$0xff]  }
  0x26   :  { %398 = vmatprep.subr.bf16.mxu0 %v560_v0  ;;  %414 = vmatprep.mubr.msk.bf16.mxu0 %vm561_vm0, %v560_v0  ;;  %v450_v3 = vld [vmem:[#allocation6 + $0x28] sm:$0xff]   ;;  %v457_v4 = vld [vmem:[#allocation8 + $0x38] sm:$0xff]   ;;  %v451_v5 = vld [vmem:[#allocation6 + $0x20] sm:$0xff]  }
  0x27   :  { %418 = vmatprep.subr.bf16.mxu1 %v560_v0  ;;  %434 = vmatprep.mubr.msk.bf16.mxu1 %vm561_vm0, %v560_v0  ;;  %v458_v6 = vld [vmem:[#allocation8 + $0x30] sm:$0xff]   ;;  %v452_v7 = vld [vmem:[#allocation6 + $0x18] sm:$0xff]   ;;  %v459_v8 = vld [vmem:[#allocation8 + $0x28] sm:$0xff]  }
  0x28   :  { %399 = vmatpush3.bf16.msra.mxu0 %v448_v1  ;;  %419 = vmatpush3.bf16.msra.mxu1 %v457_v4  ;;  %v453_v9 = vld [vmem:[#allocation6 + $0x10] sm:$0xff]   ;;  %v460_v10 = vld [vmem:[#allocation8 + $0x20] sm:$0xff]   ;;  %v454_v11 = vld [vmem:[#allocation6 + $0x8] sm:$0xff]  }
  0x29   :  { %400 = vmatprep.subr.bf16.mxu0 %v560_v0  ;;  %420 = vmatprep.subr.bf16.mxu1 %v560_v0  ;;  %v461_v12 = vld [vmem:[#allocation8 + $0x18] sm:$0xff]   ;;  %v455_v13 = vld [vmem:[#allocation6] sm:$0xff]   ;;  %v462_v15 = vld [vmem:[#allocation8 + $0x10] sm:$0xff]  }
  0x2a   :  { %v456_v14 = vld [vmem:[#allocation3] sm:$0xff]   ;;  %v463_v16 = vld [vmem:[#allocation8 + $0x8] sm:$0xff]   ;;  %v464_v17 = vld [vmem:[#allocation8] sm:$0xff]  }
  0x2b   :  { %v370_v19 = vld [vmem:[%s615_s2] ss:$0 sm:$0xff]  ;;  %s562_s2 = smov [#allocation9]  }
  0x2c   :  { %401 = vmatpush3.bf16.msra.mxu0 %v449_v2  ;;  %421 = vmatpush3.bf16.msra.mxu1 %v458_v6  ;;  %v379_v29 = vld [vmem:[%s617_s4] ss:$0 sm:$0xff]  ;;  %s348_s11 = sshll.u32 %s562_s2, 4  ;;  %s349_s11 = int_to_ptr.vmem [resolvable:$true] %s348_s11 }
  0x2d   :  { %402 = vmatprep.subr.bf16.mxu0 %v560_v0  ;;  %422 = vmatprep.subr.bf16.mxu1 %v560_v0  ;;  %s529_s12 = scalar_lea.vmem %s349_s11, 256  ;;  %p534_p2 = scmp.lt.s32.totalorder %s349_s11, %s349_s11 }
  0x2e   :  { %p530_p1 = scmp.ne.s32.totalorder %s349_s11, %s529_s12  ;;  %p535_p3 = scmp.lt.s32.totalorder %s529_s12, %s529_s12 }
  0x30   :  { %403 = vmatpush3.bf16.msra.mxu0 %v450_v3  ;;  %423 = vmatpush3.bf16.msra.mxu1 %v459_v8  ;;  %p536_p4 = por %p535_p3, %p534_p2 }
  0x31   :  { %404 = vmatprep.subr.bf16.mxu0 %v560_v0  ;;  %424 = vmatprep.subr.bf16.mxu1 %v560_v0 }
  0x32   :  { %p537_p5 = pnand %p536_p4, %p530_p1 }
  0x34   :  { %405 = vmatpush3.bf16.msra.mxu0 %v451_v5  ;;  %425 = vmatpush3.bf16.msra.mxu1 %v460_v10 }
  0x35   :  { %406 = vmatprep.subr.bf16.mxu0 %v560_v0  ;;  %426 = vmatprep.subr.bf16.mxu1 %v560_v0 }
  0x38   :  { %407 = vmatpush3.bf16.msra.mxu0 %v452_v7  ;;  %427 = vmatpush3.bf16.msra.mxu1 %v461_v12 }
  0x39   :  { %408 = vmatprep.subr.bf16.mxu0 %v560_v0  ;;  %428 = vmatprep.subr.bf16.mxu1 %v560_v0 }
  0x3c   :  { %409 = vmatpush3.bf16.msra.mxu0 %v453_v9  ;;  %429 = vmatpush3.bf16.msra.mxu1 %v462_v15 }
  0x3d   :  { %410 = vmatprep.subr.bf16.mxu0 %v560_v0  ;;  %430 = vmatprep.subr.bf16.mxu1 %v560_v0 }
  0x40   :  { %411 = vmatpush3.bf16.msra.mxu0 %v454_v11  ;;  %431 = vmatpush3.bf16.msra.mxu1 %v463_v16 }
  0x41   :  { %412 = vmatprep.subr.bf16.mxu0 %v560_v0  ;;  %432 = vmatprep.subr.bf16.mxu1 %v560_v0 }
  0x44   :  { %413 = vmatpush3.bf16.msra.mxu0 %v455_v13  ;;  %433 = vmatpush3.bf16.msra.mxu1 %v464_v17 }
  0x47   :  { %415 = vmatmul.mubr.bf16.vlgmr.msra.gmra.mxu0 %v456_v14 }
 0x107   :  { %v184_v18 = vpop.f32.mrf.mxu0 }
 0x108   :  { %v207_v21 = vadd.f32 %v370_v19, %v184_v18 }
 0x109   :  { %v416_v20 = vpop.f32.mrf.mxu0 }
 0x10a   :  { %v209_v25 = vmax.f32 %v207_v21, 0.0 }
 0x10b   :  { %v187_v22 = vpop.f32.mrf.mxu0 }
 0x10c   :  { %v208_v23 = vadd.f32 %v370_v19, %v187_v22 }
 0x10d   :  { %v417_v24 = vpop.f32.mrf.mxu0 }
 0x10e   :  { %v210_v26 = vmax.f32 %v208_v23, 0.0 }
 0x110   :  { %v213_v27 = vpack.c.bf16 %v210_v26, %v209_v25 }
 0x112   :  { %435 = vmatmul.mubr.bf16.vlgmr.msra.gmra.mxu1 %v213_v27 }
 0x1d2   :  { %v312_v28 = vpop.f32.mrf.mxu1 }
 0x1d3   :  { %v335_v31 = vadd.f32 %v379_v29, %v312_v28 }
 0x1d4   :  { %v436_v30 = vpop.f32.mrf.mxu1 }
 0x1d5   :  { %465 = vtanh.f32 %v335_v31 }
 0x1d6   :  { %v315_v32 = vpop.f32.mrf.mxu1 }
 0x1d7   :  { %v336_v34 = vadd.f32 %v379_v29, %v315_v32 }
 0x1d8   :  { %v437_v33 = vpop.f32.mrf.mxu1 }
 0x1d9   :  { %467 = vtanh.f32 %v336_v34 }
 0x1e2   :  { %v466_v35 = vpop.eup %465 }
 0x1e3   :  { %v339_v36 = vmul.f32 10.0, %v466_v35 }
 0x1e5   :  { %341 = vst [vmem:[#allocation9] sm:$0xff] %v339_v36 }
 0x1e6   :  { %v468_v37 = vpop.eup %467 }
 0x1e7   :  { %v340_v38 = vmul.f32 10.0, %v468_v37 }
 0x1e9   :  { %342 = vst [vmem:[#allocation9 + $0x8] sm:$0xff] %v340_v38 }
 0x1ea   :  { %540 = shalt.err (!%p537_p5)
}
 0x1eb   :  { %s563_s4 = smov 128   ;;  %s564_s13 = smov 8  }
 0x1ec   :  { %354 = dma.vmem_to_hbm [thread:$0]  %s349_s11, 256, %s618_s5, [#allocation5], %s563_s4, %s563_s4, %s564_s13  }
 0x1ed   :  { %553 = dma.done.wait [#allocation5], 256  }
 0x1ee   :  { %554 = vsyncadd [#allocation5], 4294967040 }
 0x1ef   :  { %358 = vsyncpa [#allocation4], 1 }
 0x1f0   :  { %359 = vsyncpa [#allocation7], 1 }
 0x1f1   :  { %360 = vsyncpa [#allocation5], 1 }

</bundles_post_ra>
